<compile_context>
chip_gen: v7x
topology: tpu7x:2x2x1
jax: 0.10.0
libtpu: 0.0.40
codegen_flags: <defaults>
</compile_context>

<pallas_src>
import jax
import jax.numpy as jnp
from jax.experimental import pallas as pl
from jax.experimental.pallas import tpu as pltpu

LANE_CANDIDATES = (1024, 512, 256, 128)
VMEM_LIMIT_BYTES = 32 * 1024 * 1024  # safe on v5e/v6e/v7x


# --------------------------------------------------------------------------- #
# Kernel
# --------------------------------------------------------------------------- #
def _make_kernel(scale):
    """Elementwise gamma kernel: optional int->float scale fused in.

    y = where(x > 0, min(exp(gamma * log(x)), 1), 0)
    which reproduces: clamp(x**gamma, 0, 1) then nan_to_num(nan=0) for
    gamma > 0 (x < 0 -> NaN -> 0, x == 0 -> 0, NaN -> 0, +inf -> 1).
    """

    def kernel(gamma_ref, x_ref, o_ref):
        gamma = gamma_ref[0]                       # scalar gamma from SMEM
        x = x_ref[...].astype(jnp.float32)
        if scale is not None:                      # fused ToDtype(..., scale=True)
            x = x * jnp.float32(scale)
        y = jnp.exp(gamma * jnp.log(x))            # 2 EUP ops / element
        y = jnp.where(x > 0, jnp.minimum(y, jnp.float32(1.0)), jnp.float32(0.0))
        o_ref[...] = y.astype(o_ref.dtype)

    return kernel


# --------------------------------------------------------------------------- #
# Helpers
# --------------------------------------------------------------------------- #
def _round_up(n, m):
    return ((n + m - 1) // m) * m


def _sublane_align(dtype):
    # f32 -> 8, bf16/f16 -> 16, (u)int8 -> 32 rows per tile.
    return max(8, 32 // jnp.dtype(dtype).itemsize)


def _chip_caps():
    """Generation-dependent block-size target and minimum grid."""
    kind = ""
    try:
        kind = jax.devices()[0].device_kind.lower()
    except Exception:  # pragma: no cover - defensive; default to v6e-ish caps
        pass
    is_v5e = ("v5 lite" in kind) or ("v5e" in kind) or ("v5litepod" in kind)
    is_v7 = "v7" in kind
    return {
        # ~2 MiB blocks on v5e (16 MiB default scoped VMEM), ~4 MiB elsewhere.
        "target_block_bytes": (2 << 20) if is_v5e else (4 << 20),
        # Only v7x has 2 TensorCores worth sharding the 1-D grid across.
        "min_grid": 2 if is_v7 else 1,
    }


def _gamma_math(x_f32, gamma):
    """Fused XLA fallback with identical semantics to the kernel."""
    y = jnp.exp(gamma * jnp.log(x_f32))
    return jnp.where(x_f32 > 0, jnp.minimum(y, 1.0), 0.0)


def _torch_reference(x_f32, gamma):
    """Literal translation of the torch forward (for testing)."""
    y = jnp.clip(jnp.power(x_f32, gamma), 0.0, 1.0)
    return jnp.where(jnp.isnan(y), 0.0, y)


def _block_rows(rows, lane_w, in_dtype, out_dtype, caps):
    row_align = max(_sublane_align(in_dtype), _sublane_align(out_dtype))
    bytes_per_row = lane_w * max(jnp.dtype(in_dtype).itemsize,
                                 jnp.dtype(out_dtype).itemsize)
    target = (caps["target_block_bytes"] // bytes_per_row) // row_align * row_align
    target = max(target, row_align)
    if caps["min_grid"] > 1:  # v7x: keep >=2 grid steps for megacore sharding
        per_core = _round_up(pl.cdiv(rows, caps["min_grid"]), row_align)
        target = min(target, max(per_core, row_align))
    if rows <= target:
        return rows  # single full-extent block (always a legal block shape)
    return target


def _launch(x2d, gamma, scale, out_dtype):
    rows, lane_w = x2d.shape
    caps = _chip_caps()
    block_rows = _block_rows(rows, lane_w, x2d.dtype, out_dtype, caps)
    grid = (pl.cdiv(rows, block_rows),)

    n = rows * lane_w
    in_bytes = n * jnp.dtype(x2d.dtype).itemsize
    out_bytes = n * jnp.dtype(out_dtype).itemsize
    cost = pl.CostEstimate(
        flops=4 * n,                 # scale + exp-arg mul + min + select
        transcendentals=2 * n,       # exp + log per element
        bytes_accessed=in_bytes + out_bytes,
    )

    return pl.pallas_call(
        _make_kernel(scale),
        out_shape=jax.ShapeDtypeStruct((rows, lane_w), out_dtype),
        grid_spec=pltpu.PrefetchScalarGridSpec(
            num_scalar_prefetch=1,   # gamma -> SMEM
            grid=grid,
            in_specs=[pl.BlockSpec((block_rows, lane_w), lambda i, g: (i, 0))],
            out_specs=pl.BlockSpec((block_rows, lane_w), lambda i, g: (i, 0)),
        ),
        compiler_params=pltpu.CompilerParams(
            dimension_semantics=("parallel",),
            vmem_limit_bytes=VMEM_LIMIT_BYTES,
        ),
        cost_estimate=cost,
    )(gamma, x2d)


# --------------------------------------------------------------------------- #
# Public entry point (RandomGamma.forward equivalent)
# --------------------------------------------------------------------------- #
def random_gamma(x, key, gamma_range=(0.5, 1.5), *, out_dtype=jnp.float32,
                 min_pallas_elems=64 * 1024):
    """Apply a random gamma augmentation. Returns (out, gamma)."""
    lo, hi = float(gamma_range[0]), float(gamma_range[1])
    # gamma = rand(1) * (hi - lo) + lo   (torch.rand -> jax.random.uniform)
    gamma = jax.random.uniform(key, (1,), dtype=jnp.float32) * (hi - lo) + lo

    orig_shape = x.shape
    out_dtype = jnp.dtype(out_dtype)

    # bool behaves like ToDtype(float32, scale=True): 0/1 floats.
    if x.dtype == jnp.bool_:
        x = x.astype(jnp.float32)
    # Integer images: scale by 1/iinfo.max, fused into the kernel.
    scale = None
    if not jnp.issubdtype(x.dtype, jnp.floating):
        scale = 1.0 / float(jnp.iinfo(x.dtype).max)

    total = x.size
    if total == 0:
        return jnp.zeros(orig_shape, out_dtype), gamma

    def _xla_fallback(xs):
        xf = xs.astype(jnp.float32)
        if scale is not None:
            xf = xf * jnp.float32(scale)
        return _gamma_math(xf, gamma[0]).astype(out_dtype)

    # Tiny inputs: pallas_call launch overhead dwarfs the work -> fused XLA.
    if total < min_pallas_elems:
        return _xla_fallback(x).reshape(orig_shape), gamma

    x_flat = x.reshape(-1)

    # Lane-dense 2-D view; widest lane dim (multiple of 128) that divides numel.
    lane_w = 128
    for cand in LANE_CANDIDATES:
        if total % cand == 0:
            lane_w = cand
            break
    aligned = (total // lane_w) * lane_w
    tail = total - aligned
    rows = aligned // lane_w

    if rows == 0:  # less than one full lane row
        return _xla_fallback(x_flat).reshape(orig_shape), gamma

    prefix = x_flat[:aligned] if tail else x_flat
    x2d = prefix.reshape(rows, lane_w)          # copy-free reshape
    out_flat = _launch(x2d, gamma, scale, out_dtype).reshape(-1)

    if tail:
        # <128 leftover elements: fused XLA math, no full-tensor pad pass.
        out_flat = jnp.concatenate([out_flat, _xla_fallback(x_flat[aligned:])])

    return out_flat.reshape(orig_shape), gamma
    # TODO(synk): a bf16 *input* storage path (callers that keep activations in
    # bf16) would halve read traffic further; gated via x.dtype already, but
    # not exercised in the demo.


# --------------------------------------------------------------------------- #
# Demo / self-test
# --------------------------------------------------------------------------- #
if __name__ == "__main__":
    key = jax.random.PRNGKey(0)
    k_x, k_gamma, k_u8 = jax.random.split(key, 3)

    # Small NCHW input. Range [-0.25, 1.25) plus injected NaN/+inf exercises
    # the clamp-to-1, negative->0 and nan->0 cleanup paths.
    x = jax.random.uniform(k_x, (2, 4, 16, 16), dtype=jnp.float32,
                           minval=-0.25, maxval=1.25)
    x = x.at[0, 0, 0, 0].set(jnp.nan)
    x = x.at[0, 0, 0, 1].set(jnp.inf)

    # min_pallas_elems=0 forces the Pallas path at this tiny demo size
    # (production default falls back to fused XLA below the threshold).
    out, gamma = random_gamma(x, k_gamma, gamma_range=(0.5, 1.5),
                              min_pallas_elems=0)
    out = jax.block_until_ready(out)

    ref = _torch_reference(x, gamma[0])
    assert out.shape == x.shape and out.dtype == jnp.float32
    assert bool(jnp.all(jnp.isfinite(out)))
    assert jnp.allclose(out, ref, atol=1e-5), "float path mismatch vs reference"

    # uint8 input: exercises the fused int->float scaling inside the kernel.
    x_u8 = jax.random.randint(k_u8, (2, 4, 16, 16), 0, 256, dtype=jnp.uint8)
    out_u8, gamma_u8 = random_gamma(x_u8, k_gamma, gamma_range=(0.5, 1.5),
                                    min_pallas_elems=0)
    out_u8 = jax.block_until_ready(out_u8)
    ref_u8 = _torch_reference(x_u8.astype(jnp.float32) / 255.0, gamma_u8[0])
    assert out_u8.dtype == jnp.float32
    assert jnp.allclose(out_u8, ref_u8, atol=1e-5), "uint8 path mismatch vs reference"

    print("KERNEL_OK")
</pallas_src>

<mosaic_0001>
module attributes {stable_mosaic.version = 11 : i64} {
  func.func @kernel(%arg0: i32, %arg1: memref<1xf32, #tpu.memory_space<smem>>, %arg2: memref<2x1024xf32, #tpu.memory_space<vmem>>, %arg3: memref<2x1024xf32, #tpu.memory_space<vmem>>) attributes {dimension_semantics = [#tpu.dimension_semantics<parallel>], iteration_bounds = array<i64: 1>, scalar_prefetch = 1 : i64, scratch_operands = 0 : i64, tpu.core_type = #tpu.core_type<tc>, window_params = [{transform_indices = @transform_0, window_bounds = array<i64: 2, 1024>}, {transform_indices = @transform_1, window_bounds = array<i64: 2, 1024>}]} {
    %c0 = arith.constant 0 : index
    %0 = memref.load %arg1[%c0] : memref<1xf32, #tpu.memory_space<smem>>
    %c0_0 = arith.constant 0 : index
    %c0_1 = arith.constant 0 : index
    %1 = vector.load %arg2[%c0_0, %c0_1] : memref<2x1024xf32, #tpu.memory_space<vmem>>, vector<2x1024xf32>
    %2 = math.log %1 : vector<2x1024xf32>
    %3 = vector.broadcast %0 : f32 to vector<2x1024xf32>
    %4 = arith.mulf %3, %2 : vector<2x1024xf32>
    %5 = math.exp %4 : vector<2x1024xf32>
    %cst = arith.constant 0.000000e+00 : f32
    %6 = vector.broadcast %cst : f32 to vector<2x1024xf32>
    %7 = arith.cmpf ogt, %1, %6 : vector<2x1024xf32>
    %cst_2 = arith.constant 1.000000e+00 : f32
    %8 = vector.broadcast %cst_2 : f32 to vector<2x1024xf32>
    %9 = arith.minimumf %5, %8 : vector<2x1024xf32>
    %cst_3 = arith.constant 0.000000e+00 : f32
    %10 = vector.broadcast %cst_3 : f32 to vector<2x1024xf32>
    %11 = arith.select %7, %9, %10 : vector<2x1024xi1>, vector<2x1024xf32>
    %c0_4 = arith.constant 0 : index
    %c0_5 = arith.constant 0 : index
    %12 = vector.load %arg3[%c0_4, %c0_5] : memref<2x1024xf32, #tpu.memory_space<vmem>>, vector<2x1024xf32>
    tpu.vector_store %arg3[%c0_4, %c0_5], %11 {strides = array<i32>} : memref<2x1024xf32, #tpu.memory_space<vmem>>, vector<2x1024xf32>,
    return
  }
  func.func @transform_0(%arg0: i32, %arg1: memref<1xf32, #tpu.memory_space<smem>>) -> (i32, i32) {
    %c0_i32 = arith.constant 0 : i32
    %c0_i32_0 = arith.constant 0 : i32
    return %arg0, %c0_i32 : i32, i32
  }
  func.func @transform_1(%arg0: i32, %arg1: memref<1xf32, #tpu.memory_space<smem>>) -> (i32, i32) {
    %c0_i32 = arith.constant 0 : i32
    %c0_i32_0 = arith.constant 0 : i32
    return %arg0, %c0_i32 : i32, i32
  }
}

</mosaic_0001>

<bundles_post_ra>
// kernel: tpu_custom_call.1
= control target key start
LH: loop header
LB: loop body
LE: loop exit
PB: predicated region body
PF: predicated region fallthrough
CT: control target
= control target key end

     0   :  { %8 = vsyncpa [#allocation5], 0  ;;  %s162_s0 = inlined_call_operand.<no memory space> [shape: f32[1], index: 0, kind: input, shape index: {}]   ;;  %s163_s1 = inlined_call_operand.hbm [shape: f32[2,1024], index: 1, kind: input, shape index: {}]   ;;  %s164_s2 = inlined_call_operand.hbm [shape: f32[2,1024], index: 2, kind: output, shape index: {}]  }
   0x1   :  { %9 = vsyncpa [#allocation6], 0  ;;  %s118_s9 = smov [#allocation4]   ;;  %s70_s13 = scalar_lea.hbm %s163_s1, 256 }
   0x2   :  { %s16_s10 = sshll.u32 %s118_s9, 4  ;;  %p71_p0 = scmp.ne.s32.totalorder %s163_s1, %s70_s13  ;;  %s17_s10 = int_to_ptr.vmem [resolvable:$true] %s16_s10 }
   0x3   :  { %p74_p1 = scmp.lt.u32.totalorder %s70_s13, %s163_s1 }
   0x5   :  { %p76_p2 = pnand %p74_p1, %p71_p0 }
   0x7   :  { %79 = shalt.err (!%p76_p2)
}
   0x8   :  { %s80_s18 = scalar_lea.vmem %s17_s10, 256  ;;  %p85_p4 = scmp.lt.s32.totalorder %s17_s10, %s17_s10 }
   0x9   :  { %p81_p3 = scmp.ne.s32.totalorder %s17_s10, %s80_s18  ;;  %p86_p5 = scmp.lt.s32.totalorder %s80_s18, %s80_s18 }
   0xb   :  { %p87_p6 = por %p86_p5, %p85_p4 }
   0xd   :  { %p88_p7 = pnand %p87_p6, %p81_p3 }
   0xf   :  { %91 = shalt.err (!%p88_p7)
}
  0x10   :  { %19 = dma.hbm_to_vmem [thread:$0]  %s163_s1, 256, %s17_s10, [#allocation5]  }
  0x11   :  { %114 = dma.done.wait [#allocation5], 256  }
  0x12   :  { %115 = vsyncadd [#allocation5], 4294967040  ;;  %v24_v0 = vld [vmem:[#allocation4] sm:$0xff]  ;;  %v25_v1 = vld [vmem:[#allocation4 + $0x8] sm:$0xff]  ;;  %v30_v3 = vstv %s162_s0  ;;  %s119_s1 = smov [#allocation7]  }
  0x13   :  { %62 = vlog2.f32 %v24_v0  ;;  %vm37_vm0 = vcmp.gt.f32.partialorder %v24_v0, 0.0  ;;  %s51_s23 = sshll.u32 %s119_s1, 4  ;;  %vm38_vm1 = vcmp.gt.f32.partialorder %v25_v1, 0.0  ;;  %s52_s23 = int_to_ptr.vmem [resolvable:$true] %s51_s23 }
  0x14   :  { %64 = vlog2.f32 %v25_v1  ;;  %s92_s0 = scalar_lea.vmem %s52_s23, 256  ;;  %p97_p9 = scmp.lt.s32.totalorder %s52_s23, %s52_s23 }
  0x15   :  { %p93_p8 = scmp.ne.s32.totalorder %s52_s23, %s92_s0  ;;  %p98_p10 = scmp.lt.s32.totalorder %s92_s0, %s92_s0 }
  0x17   :  { %p99_p11 = por %p98_p10, %p97_p9 }
  0x19   :  { %p100_p12 = pnand %p99_p11, %p93_p8 }
  0x1d   :  { %v63_v2 = vpop.eup %62 }
  0x1e   :  { %v65_v4 = vpop.eup %64  ;;  %v27_v5 = vmul.f32 0.6931472, %v63_v2 }
  0x1f   :  { %v29_v6 = vmul.f32 0.6931472, %v65_v4 }
  0x20   :  { %v31_v7 = vmul.f32 %v30_v3, %v27_v5 }
  0x21   :  { %v32_v8 = vmul.f32 %v30_v3, %v29_v6 }
  0x22   :  { %v33_v9 = vmul.f32 1.442695, %v31_v7 }
  0x23   :  { %v35_v10 = vmul.f32 1.442695, %v32_v8 }
  0x24   :  { %66 = vpow2.f32 %v33_v9 }
  0x25   :  { %68 = vpow2.f32 %v35_v10 }
  0x2e   :  { %v67_v11 = vpop.eup %66 }
  0x2f   :  { %v69_v12 = vpop.eup %68  ;;  %v39_v13 = vmin.f32 %v67_v11, 1.0 }
  0x30   :  { %v40_v14 = vmin.f32 %v69_v12, 1.0 }
  0x31   :  { %v41_v15 = vsel %vm37_vm0, %v39_v13, 0.0 }
  0x32   :  { %43 = vst [vmem:[#allocation7] sm:$0xff] %v41_v15  ;;  %v42_v16 = vsel %vm38_vm1, %v40_v14, 0.0 }
  0x33   :  { %44 = vst [vmem:[#allocation7 + $0x8] sm:$0xff] %v42_v16 }
  0x34   :  { %103 = shalt.err (!%p100_p12)
}
  0x35   :  { %s104_s26 = scalar_lea.hbm %s164_s2, 256 }
  0x36   :  { %p105_p13 = scmp.ne.s32.totalorder %s164_s2, %s104_s26  ;;  %p108_p0 = scmp.lt.u32.totalorder %s104_s26, %s164_s2 }
  0x38   :  { %p110_p1 = pnand %p108_p0, %p105_p13 }
  0x3a   :  { %113 = shalt.err (!%p110_p1)
}
  0x3b   :  { %54 = dma.vmem_to_hbm [thread:$0]  %s52_s23, 256, %s164_s2, [#allocation6]  }
  0x3c   :  { %116 = dma.done.wait [#allocation6], 256  }
  0x3d   :  { %117 = vsyncadd [#allocation6], 4294967040 }
  0x3e   :  { %58 = vsyncpa [#allocation5], 1 }
  0x3f   :  { %59 = vsyncpa [#allocation6], 1 }

</bundles_post_ra>
